<compile_context>
chip_gen: v7x
topology: tpu7x:2x2x1
jax: 0.10.0
libtpu: 0.0.40
codegen_flags: <defaults>
</compile_context>

<pallas_src>
import functools

import jax
import jax.numpy as jnp
from jax.experimental import pallas as pl
from jax.experimental.pallas import tpu as pltpu

TARGET_BLOCK_BYTES = 8 << 20     # ~8 MiB per block; x4 (in+out double-buffered) = 32 MiB resident
VMEM_LIMIT_BYTES = 48 << 20      # raise scoped VMEM so the 32 MiB resident fits on all gens


def _mish_kernel(x_ref, o_ref):
    # Compute in f32 for accuracy, cast back to the output dtype.
    x = x_ref[...].astype(jnp.float32)
    # tanh(softplus(x)) = (e^x * (e^x + 2)) / (e^x * (e^x + 2) + 2)
    # Clamp at 20 before exp: e^20 ~ 4.9e8, so num ~ 2.4e17 never overflows
    # f32, and for x >= 20 the ratio rounds to exactly 1.0f -> y == x.
    t = jnp.exp(jnp.minimum(x, 20.0))
    num = t * (t + 2.0)
    y = x * (num * pl.reciprocal(num + 2.0, approx=False))
    o_ref[...] = y.astype(o_ref.dtype)


def _mish_jnp(x):
    """Reference / tail path (identical math to torch: x * tanh(softplus(x)))."""
    x32 = x.astype(jnp.float32)
    return (x32 * jnp.tanh(jax.nn.softplus(x32))).astype(x.dtype)


@functools.lru_cache(maxsize=1)
def _grid_semantics():
    """(dimension_semantics, num_cores) — CORE_PARALLEL only on v7x."""
    try:
        kind = jax.devices()[0].device_kind.lower()
    except Exception:  # pragma: no cover - defensive
        kind = ""
    if "v7" in kind or "7x" in kind:
        return (pltpu.CORE_PARALLEL,), 2
    return ("parallel",), 1


def _round_up(v, m):
    return ((v + m - 1) // m) * m


def _choose_tile_rows(rows, lanes, itemsize, num_cores):
    """Dtype/size-adaptive row tile targeting TARGET_BLOCK_BYTES per block."""
    row_align = 8 * max(1, 4 // itemsize)          # 8 (f32) / 16 (bf16) / 32 (int8)
    if rows <= row_align:
        return rows                                # single full-extent block (always legal)
    max_tr = max(row_align,
                 (TARGET_BLOCK_BYTES // (lanes * itemsize)) // row_align * row_align)
    # Keep at least 2 blocks per core so the DMA pipeline overlaps and (on
    # v7x) both TensorCores get work.
    min_steps = 2 * max(1, num_cores)
    balanced = _round_up(pl.cdiv(rows, min_steps), row_align)
    return min(max_tr, balanced)


def _mish_2d(x2d, tile_rows=None):
    rows, lanes = x2d.shape
    itemsize = x2d.dtype.itemsize
    dim_sem, num_cores = _grid_semantics()
    tr = tile_rows if tile_rows is not None else _choose_tile_rows(
        rows, lanes, itemsize, num_cores)
    grid = (pl.cdiv(rows, tr),)

    def call(sem):
        return pl.pallas_call(
            _mish_kernel,
            out_shape=jax.ShapeDtypeStruct((rows, lanes), x2d.dtype),
            grid_spec=pltpu.PrefetchScalarGridSpec(
                num_scalar_prefetch=0,
                grid=grid,
                in_specs=[pl.BlockSpec((tr, lanes), lambda i: (i, 0))],
                out_specs=pl.BlockSpec((tr, lanes), lambda i: (i, 0)),
            ),
            compiler_params=pltpu.CompilerParams(
                dimension_semantics=sem,
                vmem_limit_bytes=VMEM_LIMIT_BYTES,
            ),
            cost_estimate=pl.CostEstimate(
                flops=6 * rows * lanes,
                transcendentals=rows * lanes,
                bytes_accessed=2 * rows * lanes * itemsize,
            ),
        )(x2d)

    if dim_sem == ("parallel",):
        return call(dim_sem)
    try:
        return call(dim_sem)                 # CORE_PARALLEL (v7x)
    except Exception:
        return call(("parallel",))           # safe fallback, worst case neutral


def mish(x: jax.Array, *, tile_rows: int | None = None) -> jax.Array:
    """Elementwise Mish: x * tanh(softplus(x)). Matches PyTorch semantics."""
    orig_shape = x.shape
    n = x.size
    if n == 0:
        return x
    flat = x.reshape(-1)

    # Widest lane count that divides n exactly: the whole array streams
    # through the kernel with ZERO extra copies (reshape of flat is free),
    # and stores stay unmasked / lane-dense (>= 128 lanes).
    lanes = next((c for c in (1024, 512, 256, 128) if n % c == 0), 0)
    if lanes == 0:
        # n not a multiple of 128 (rare). Push the 1024-aligned bulk through
        # the kernel; finish the < 1024-element tail with plain jnp.
        n_bulk = (n // 1024) * 1024
        if n_bulk == 0:
            return _mish_jnp(flat).reshape(orig_shape)
        # TODO(synk): this rare path still pays one extra copy of the bulk
        # (prefix slice + concatenate); a 1D-blocked kernel would remove it,
        # but the 2D slab is kept for robustness.
        out_bulk = _mish_2d(flat[:n_bulk].reshape(n_bulk // 1024, 1024),
                            tile_rows).reshape(-1)
        tail = _mish_jnp(flat[n_bulk:])
        return jnp.concatenate([out_bulk, tail]).reshape(orig_shape)

    x2d = flat.reshape(n // lanes, lanes)
    return _mish_2d(x2d, tile_rows).reshape(orig_shape)


if __name__ == "__main__":
    key = jax.random.PRNGKey(0)

    # Primary check: small NCHW input as the PyTorch module would see.
    x = jax.random.normal(key, (2, 4, 16, 16), dtype=jnp.float32) * 3.0
    y = jax.block_until_ready(mish(x))
    assert y.shape == x.shape and y.dtype == x.dtype
    assert jnp.allclose(y, _mish_jnp(x), atol=1e-5, rtol=1e-5), "mismatch vs reference"

    # n % 1024 != 0 but n % 128 == 0 -> narrower (128-lane) zero-copy slab.
    x2 = jax.random.normal(jax.random.PRNGKey(1), (2, 4, 16, 17), dtype=jnp.float32) * 3.0
    y2 = jax.block_until_ready(mish(x2))
    assert jnp.allclose(y2, _mish_jnp(x2), atol=1e-5, rtol=1e-5), "128-lane path mismatch"

    # Truly ragged n (not a multiple of 128): kernel bulk + jnp tail.
    x3 = jax.random.normal(jax.random.PRNGKey(2), (3000,), dtype=jnp.float32) * 3.0
    y3 = jax.block_until_ready(mish(x3))
    assert jnp.allclose(y3, _mish_jnp(x3), atol=1e-5, rtol=1e-5), "ragged mismatch"

    # Multi-block grid (forced small tile) incl. masked partial last block.
    x4 = jax.random.normal(jax.random.PRNGKey(3), (5 * 1024 + 512,), dtype=jnp.float32) * 3.0
    y4 = jax.block_until_ready(mish(x4, tile_rows=8))
    assert jnp.allclose(y4, _mish_jnp(x4), atol=1e-5, rtol=1e-5), "multi-block mismatch"

    # bf16: dtype-adaptive tile + multi-step auto grid.
    x5 = (jax.random.normal(jax.random.PRNGKey(4), (64, 1024), dtype=jnp.float32) * 3.0
          ).astype(jnp.bfloat16)
    y5 = jax.block_until_ready(mish(x5))
    assert y5.dtype == jnp.bfloat16
    assert jnp.allclose(y5.astype(jnp.float32), _mish_jnp(x5).astype(jnp.float32),
                        atol=1e-2, rtol=1e-2), "bf16 mismatch"

    print("KERNEL_OK")
</pallas_src>

<mosaic_0001>
module attributes {stable_mosaic.version = 11 : i64} {
  func.func @_mish_kernel(%arg0: i32, %arg1: memref<2x1024xf32, #tpu.memory_space<vmem>>, %arg2: memref<2x1024xf32, #tpu.memory_space<vmem>>) attributes {dimension_semantics = [#tpu.dimension_semantics<parallel>], iteration_bounds = array<i64: 1>, scalar_prefetch = 0 : i64, scratch_operands = 0 : i64, tpu.core_type = #tpu.core_type<tc>, window_params = [{transform_indices = @transform_0, window_bounds = array<i64: 2, 1024>}, {transform_indices = @transform_1, window_bounds = array<i64: 2, 1024>}]} {
    %c0 = arith.constant 0 : index
    %c0_0 = arith.constant 0 : index
    %0 = vector.load %arg1[%c0, %c0_0] : memref<2x1024xf32, #tpu.memory_space<vmem>>, vector<2x1024xf32>
    %cst = arith.constant 2.000000e+01 : f32
    %1 = vector.broadcast %cst : f32 to vector<2x1024xf32>
    %2 = arith.minimumf %0, %1 : vector<2x1024xf32>
    %3 = math.exp %2 : vector<2x1024xf32>
    %cst_1 = arith.constant 2.000000e+00 : f32
    %4 = vector.broadcast %cst_1 : f32 to vector<2x1024xf32>
    %5 = arith.addf %3, %4 : vector<2x1024xf32>
    %6 = arith.mulf %3, %5 : vector<2x1024xf32>
    %cst_2 = arith.constant 2.000000e+00 : f32
    %7 = vector.broadcast %cst_2 : f32 to vector<2x1024xf32>
    %8 = arith.addf %6, %7 : vector<2x1024xf32>
    %9 = tpu.reciprocal %8 : vector<2x1024xf32> -> vector<2x1024xf32>
    %10 = arith.mulf %6, %9 : vector<2x1024xf32>
    %11 = arith.mulf %0, %10 : vector<2x1024xf32>
    %c0_3 = arith.constant 0 : index
    %c0_4 = arith.constant 0 : index
    %12 = vector.load %arg2[%c0_3, %c0_4] : memref<2x1024xf32, #tpu.memory_space<vmem>>, vector<2x1024xf32>
    tpu.vector_store %arg2[%c0_3, %c0_4], %11 {strides = array<i32>} : memref<2x1024xf32, #tpu.memory_space<vmem>>, vector<2x1024xf32>,
    return
  }
  func.func @transform_0(%arg0: i32) -> (i32, i32) {
    %c0_i32 = arith.constant 0 : i32
    %c0_i32_0 = arith.constant 0 : i32
    return %arg0, %c0_i32 : i32, i32
  }
  func.func @transform_1(%arg0: i32) -> (i32, i32) {
    %c0_i32 = arith.constant 0 : i32
    %c0_i32_0 = arith.constant 0 : i32
    return %arg0, %c0_i32 : i32, i32
  }
}

</mosaic_0001>

<bundles_post_ra>
// kernel: tpu_custom_call.1
= control target key start
LH: loop header
LB: loop body
LE: loop exit
PB: predicated region body
PF: predicated region fallthrough
CT: control target
= control target key end

     0   :  { %6 = vsyncpa [#allocation3], 0  ;;  %s152_s0 = inlined_call_operand.hbm [shape: f32[2,1024], index: 0, kind: input, shape index: {}]   ;;  %s153_s1 = inlined_call_operand.hbm [shape: f32[2,1024], index: 1, kind: output, shape index: {}]  }
   0x1   :  { %7 = vsyncpa [#allocation4], 0  ;;  %s116_s6 = smov [#allocation2]   ;;  %s68_s10 = scalar_lea.hbm %s152_s0, 256 }
   0x2   :  { %s14_s7 = sshll.u32 %s116_s6, 4  ;;  %p69_p0 = scmp.ne.s32.totalorder %s152_s0, %s68_s10  ;;  %s15_s7 = int_to_ptr.vmem [resolvable:$true] %s14_s7 }
   0x3   :  { %p72_p1 = scmp.lt.u32.totalorder %s68_s10, %s152_s0 }
   0x5   :  { %p74_p2 = pnand %p72_p1, %p69_p0 }
   0x7   :  { %77 = shalt.err (!%p74_p2)
}
   0x8   :  { %s78_s15 = scalar_lea.vmem %s15_s7, 256  ;;  %p83_p4 = scmp.lt.s32.totalorder %s15_s7, %s15_s7 }
   0x9   :  { %p79_p3 = scmp.ne.s32.totalorder %s15_s7, %s78_s15  ;;  %p84_p5 = scmp.lt.s32.totalorder %s78_s15, %s78_s15 }
   0xb   :  { %p85_p6 = por %p84_p5, %p83_p4 }
   0xd   :  { %p86_p7 = pnand %p85_p6, %p79_p3 }
   0xf   :  { %89 = shalt.err (!%p86_p7)
}
  0x10   :  { %17 = dma.hbm_to_vmem [thread:$0]  %s152_s0, 256, %s15_s7, [#allocation3]  }
  0x11   :  { %112 = dma.done.wait [#allocation3], 256  }
  0x12   :  { %113 = vsyncadd [#allocation3], 4294967040  ;;  %v21_v0 = vld [vmem:[#allocation2] sm:$0xff]  ;;  %v22_v1 = vld [vmem:[#allocation2 + $0x8] sm:$0xff]  ;;  %s117_s0 = smov [#allocation5]  }
  0x13   :  { %v23_v2 = vmin.f32 %v21_v0, 20.0  ;;  %v24_v3 = vmin.f32 %v22_v1, 20.0  ;;  %s49_s18 = sshll.u32 %s117_s0, 4  ;;  %s50_s18 = int_to_ptr.vmem [resolvable:$true] %s49_s18 }
  0x14   :  { %s90_s19 = scalar_lea.vmem %s50_s18, 256  ;;  %p95_p9 = scmp.lt.s32.totalorder %s50_s18, %s50_s18 }
  0x15   :  { %v25_v4 = vmul.f32 1.442695, %v23_v2  ;;  %v27_v5 = vmul.f32 1.442695, %v24_v3  ;;  %p91_p8 = scmp.ne.s32.totalorder %s50_s18, %s90_s19  ;;  %p96_p10 = scmp.lt.s32.totalorder %s90_s19, %s90_s19 }
  0x17   :  { %60 = vpow2.f32 %v25_v4  ;;  %p97_p11 = por %p96_p10, %p95_p9 }
  0x18   :  { %62 = vpow2.f32 %v27_v5 }
  0x19   :  { %p98_p12 = pnand %p97_p11, %p91_p8 }
  0x21   :  { %v61_v6 = vpop.eup %60 }
  0x22   :  { %v63_v7 = vpop.eup %62  ;;  %v29_v8 = vadd.f32 2.0, %v61_v6 }
  0x23   :  { %v30_v9 = vadd.f32 2.0, %v63_v7 }
  0x24   :  { %v31_v10 = vmul.f32 %v61_v6, %v29_v8 }
  0x25   :  { %v32_v11 = vmul.f32 %v63_v7, %v30_v9 }
  0x26   :  { %v33_v12 = vadd.f32 2.0, %v31_v10 }
  0x27   :  { %v34_v13 = vadd.f32 2.0, %v32_v11 }
  0x28   :  { %64 = vrcp.f32 %v33_v12 }
  0x29   :  { %66 = vrcp.f32 %v34_v13 }
  0x32   :  { %v65_v14 = vpop.eup %64 }
  0x33   :  { %v67_v15 = vpop.eup %66  ;;  %v37_v16 = vmul.f32 %v65_v14, %v31_v10 }
  0x34   :  { %v38_v17 = vmul.f32 %v67_v15, %v32_v11 }
  0x35   :  { %v39_v18 = vmul.f32 %v37_v16, %v21_v0 }
  0x36   :  { %v40_v19 = vmul.f32 %v38_v17, %v22_v1 }
  0x37   :  { %41 = vst [vmem:[#allocation5] sm:$0xff] %v39_v18 }
  0x38   :  { %42 = vst [vmem:[#allocation5 + $0x8] sm:$0xff] %v40_v19 }
  0x39   :  { %101 = shalt.err (!%p98_p12)
}
  0x3a   :  { %s102_s22 = scalar_lea.hbm %s153_s1, 256 }
  0x3b   :  { %p103_p13 = scmp.ne.s32.totalorder %s153_s1, %s102_s22  ;;  %p106_p0 = scmp.lt.u32.totalorder %s102_s22, %s153_s1 }
  0x3d   :  { %p108_p1 = pnand %p106_p0, %p103_p13 }
  0x3f   :  { %111 = shalt.err (!%p108_p1)
}
  0x40   :  { %52 = dma.vmem_to_hbm [thread:$0]  %s50_s18, 256, %s153_s1, [#allocation4]  }
  0x41   :  { %114 = dma.done.wait [#allocation4], 256  }
  0x42   :  { %115 = vsyncadd [#allocation4], 4294967040 }
  0x43   :  { %56 = vsyncpa [#allocation3], 1 }
  0x44   :  { %57 = vsyncpa [#allocation4], 1 }

</bundles_post_ra>
